<compile_context>
chip_gen: v6e
topology: v6e:2x2x1
jax: 0.10.0
libtpu: 0.0.40
codegen_flags: <defaults>
</compile_context>

<pallas_src>
import jax
import jax.numpy as jnp
from jax.experimental import pallas as pl
from jax.experimental.pallas import tpu as pltpu


# -------------------------- roll convention probe ----------------------------

_ROLL_SIGN = None


def _roll_sign():
    """Returns s such that pltpu.roll(x, s*k, axis=-1)[..., i] == x[..., i-k]
    (jnp.roll semantics), determined once with a tiny probe kernel."""
    global _ROLL_SIGN
    if _ROLL_SIGN is not None:
        return _ROLL_SIGN

    def probe(x_ref, o_ref):
        o_ref[...] = pltpu.roll(x_ref[...], 1, axis=1)

    x = jnp.tile(jnp.arange(128, dtype=jnp.float32)[None, :], (8, 1))
    out = pl.pallas_call(
        probe, out_shape=jax.ShapeDtypeStruct((8, 128), jnp.float32))(x)
    if bool(jnp.array_equal(out, jnp.roll(x, 1, axis=1))):
        _ROLL_SIGN = 1
    elif bool(jnp.array_equal(out, jnp.roll(x, -1, axis=1))):
        _ROLL_SIGN = -1
    else:
        raise AssertionError("unrecognised pltpu.roll convention")
    return _ROLL_SIGN


# --------------------------------- kernel ------------------------------------

def _make_kernel(roll_sign, mxu_dtype):
    """Builds the fused autoencoder kernel.  mxu_dtype=None keeps every matmul
    in f32 (bit-stable pooling); jnp.bfloat16 feeds the MXU bf16 operands with
    f32 accumulation (v6e/v7x throughput path)."""

    def _roll(v, shift):
        return pltpu.roll(v, shift % v.shape[1], axis=1)

    def shl(v, k):   # out[:, i] = v[:, i + k]; wrapped-in lanes are don't-care
        return _roll(v, -roll_sign * k)

    def shr(v, k):   # out[:, i] = v[:, i - k]; wrapped-in lanes are masked or 0
        return _roll(v, roll_sign * k)

    def mm(w, xcat, b):
        if mxu_dtype is not None:
            w, xcat = w.astype(mxu_dtype), xcat.astype(mxu_dtype)
        return jnp.dot(w, xcat, preferred_element_type=jnp.float32) + b

    def conv(v, w_ref, b_ref, d):
        # Conv1d(k=3, s=1, p=0) at lane dilation d: one im2col MXU matmul.
        xcat = jnp.concatenate([v, shl(v, d), shl(v, 2 * d)], axis=0)
        return mm(w_ref[...], xcat, b_ref[...])

    def deconv(v, w_ref, b_ref, d):
        # ConvTranspose1d(k=3) at lane dilation d.  Relies on v being exactly
        # zero off its active lane grid (guaranteed: v is an unpool output).
        xcat = jnp.concatenate([v, shr(v, d), shr(v, 2 * d)], axis=0)
        return mm(w_ref[...], xcat, b_ref[...])

    def pool(h, d):
        # max_pool1d(k=2, s=2): pooled value stays at the even lane of each
        # pair (lane stride doubles to 2d).  Ties pick the even index, matching
        # argmax-first.  t == 1.0 where the odd element won.
        nxt = shl(h, d)
        return jnp.maximum(h, nxt), (nxt > h).astype(jnp.float32)

    def unpool(v, t, d, m_even, m_odd):
        # max_unpool1d(k=2): scatter v back onto the stride-d lane grid.  The
        # 0/1 masks also zero every off-grid / out-of-range lane, which the
        # following deconv depends on.  All garbage values are finite, so 0*x
        # masking is exact.
        return m_even * (v * (1.0 - t)) + m_odd * shr(v * t, d)

    def kernel(x_ref,
               w1_ref, b1_ref, w2_ref, b2_ref, w3_ref, b3_ref,
               d1_ref, db1_ref, d2_ref, db2_ref, d3_ref, db3_ref,
               mask_ref, out_ref):
        x = x_ref[0]                                          # (1, B*64)

        # conv_1 (Cin=1): rank-1 taps -> VPU broadcast multiply-adds (f32).
        w1 = w1_ref[...]                                      # (32, 3)
        h1 = (b1_ref[...] + w1[:, 0:1] * x
              + w1[:, 1:2] * shl(x, 1) + w1[:, 2:3] * shl(x, 2))   # (32, W) d=1
        p1, t1 = pool(h1, 1)                                  # active lanes %2==0
        h2 = conv(p1, w2_ref, b2_ref, 2)                      # (64, W)  d=2
        p2, t2 = pool(h2, 2)                                  # lanes %4==0
        h3 = conv(p2, w3_ref, b3_ref, 4)                      # (128, W) d=4
        p3, t3 = pool(h3, 4)                                  # lanes %8==0

        m = mask_ref[...]                                     # (8, W) 0/1 masks
        u3 = unpool(p3, t3, 4, m[0:1], m[1:2])                # (128, W) d=4
        q1 = deconv(u3, d1_ref, db1_ref, 4)                   # (64, W)  d=4
        u2 = unpool(q1, t2, 2, m[2:3], m[3:4])                # (64, W)  d=2
        q2 = deconv(u2, d2_ref, db2_ref, 2)                   # (32, W)  d=2
        u1 = unpool(q2, t1, 1, m[4:5], m[5:6])                # (32, W)  d=1
        out_ref[0] = deconv(u1, d3_ref, db3_ref, 1)           # (1, W)

    return kernel


# --------------------------------- wrapper ------------------------------------

def autoencoder3_forward(x, kparams, masks, *, block_b, mxu_dtype=None):
    n, c, l0 = x.shape
    assert c == 1, c
    assert l0 % 2 == 0, l0
    # TODO(synk): pad / tail-block path when n is not a multiple of block_b.
    assert n % block_b == 0, (n, block_b)
    g = n // block_b
    w = block_b * l0
    xr = x.reshape(g, 1, w)              # lane-dense batch-folded input slabs

    consts = list(kparams) + [masks]
    in_specs = [pl.BlockSpec((1, 1, w), lambda i: (i, 0, 0))]
    # Constant operands use the same block every grid step (fetched once);
    # they total < 300 KiB so they fit easily even in v7x's VMEM budget.
    in_specs += [pl.BlockSpec(p.shape, lambda i: (0, 0)) for p in consts]

    macs_per_lane = 3 * (1 * 32 + 32 * 64 + 64 * 128 + 128 * 64 + 64 * 32 + 32)
    cost = pl.CostEstimate(
        flops=2 * macs_per_lane * n * l0,
        transcendentals=0,
        bytes_accessed=4 * (2 * n * l0 + sum(int(p.size) for p in consts)))

    grid_spec = pltpu.PrefetchScalarGridSpec(
        num_scalar_prefetch=0,
        grid=(g,),
        in_specs=in_specs,
        out_specs=pl.BlockSpec((1, 1, w), lambda i: (i, 0, 0)),
    )
    out = pl.pallas_call(
        _make_kernel(_roll_sign(), mxu_dtype),
        out_shape=jax.ShapeDtypeStruct((g, 1, w), jnp.float32),
        grid_spec=grid_spec,
        cost_estimate=cost,
        compiler_params=pltpu.CompilerParams(
            dimension_semantics=("parallel",)),
    )(xr, *consts)
    return out.reshape(n, 1, l0)


# ------------------------- parameters (deterministic) ------------------------

def init_raw_params(key):
    """PyTorch-layout weights: conv (Cout, Cin, 3), deconv (Cin, Cout, 3)."""
    def u(k, shape, fan_in):
        b = 1.0 / jnp.sqrt(jnp.float32(fan_in))
        return jax.random.uniform(k, shape, jnp.float32, -b, b)
    ks = jax.random.split(key, 12)
    return {
        "w1": u(ks[0], (32, 1, 3), 1 * 3),    "b1": u(ks[1], (32,), 1 * 3),
        "w2": u(ks[2], (64, 32, 3), 32 * 3),  "b2": u(ks[3], (64,), 32 * 3),
        "w3": u(ks[4], (128, 64, 3), 64 * 3), "b3": u(ks[5], (128,), 64 * 3),
        "d1": u(ks[6], (128, 64, 3), 64 * 3), "db1": u(ks[7], (64,), 64 * 3),
        "d2": u(ks[8], (64, 32, 3), 32 * 3),  "db2": u(ks[9], (32,), 32 * 3),
        "d3": u(ks[10], (32, 1, 3), 1 * 3),   "db3": u(ks[11], (1,), 1 * 3),
    }


def kernel_params(raw):
    """Repack to im2col layout: weights (Cout, 3*Cin), biases (Cout, 1)."""
    def conv_w(w):    # (Cout, Cin, 3) -> (Cout, 3*Cin), columns [tap0|tap1|tap2]
        return jnp.transpose(w, (0, 2, 1)).reshape(w.shape[0], -1)
    def deconv_w(w):  # (Cin, Cout, 3) -> (Cout, 3*Cin), same column order
        return jnp.transpose(w, (1, 2, 0)).reshape(w.shape[1], -1)
    def bb(b):
        return b.reshape(-1, 1)
    return [
        raw["w1"][:, 0, :], bb(raw["b1"]),        # conv_1 stays (32, 3): VPU path
        conv_w(raw["w2"]), bb(raw["b2"]),
        conv_w(raw["w3"]), bb(raw["b3"]),
        deconv_w(raw["d1"]), bb(raw["db1"]),
        deconv_w(raw["d2"]), bb(raw["db2"]),
        deconv_w(raw["d3"]), bb(raw["db3"]),
    ]


def unpool_lane_masks(block_b, l0):
    """Six 0/1 lane masks, packed as one (8, block_b*l0) f32 slab, marking for
    each max-unpool stage the lanes that receive the even / odd element of each
    pooled pair.  All other lanes stay exactly zero (the deconvs rely on it)."""
    lens = []
    length = l0
    for _ in range(3):
        length = (length - 2) // 2       # Conv1d(k=3) then MaxPool1d(k=2,s=2)
        assert length > 0, l0
        lens.append(length)
    j1, j2, j3 = lens
    p = jnp.arange(l0)
    rows = []
    for j, d in ((j3, 4), (j2, 2), (j1, 1)):   # decoder order: unpool_3, 2, 1
        assert j * 2 * d <= l0, (j, d, l0)     # active grid fits in the slot
        valid = p < j * 2 * d
        rows.append((p % (2 * d) == 0) & valid)     # even element of the pair
        rows.append((p % (2 * d) == d) & valid)     # odd element of the pair
    rows += [jnp.zeros((l0,), bool)] * 2            # pad to 8 sublanes
    return jnp.tile(jnp.stack(rows).astype(jnp.float32), (1, block_b))


# ----------------------- pure-JAX reference (for checking) -------------------

def reference_forward(x, raw):
    def conv(x, w, b):                       # x (N,Cin,L), w (Cout,Cin,3)
        lout = x.shape[2] - 2
        cols = jnp.stack([x[:, :, k:k + lout] for k in range(3)], axis=-1)
        return jnp.einsum("nclk,ock->nol", cols, w) + b[None, :, None]

    def deconv(x, w, b):                     # w (Cin,Cout,3)
        n, cin, lin = x.shape
        cout = w.shape[1]
        out = jnp.zeros((n, cout, lin + 2), jnp.float32)
        part = jnp.einsum("ncl,cok->nokl", x, w)
        for k in range(3):
            out = out.at[:, :, k:k + lin].add(part[:, :, k])
        return out + b[None, :, None]

    def pool(x):
        n, c, l = x.shape
        p = l // 2
        xw = x[:, :, :2 * p].reshape(n, c, p, 2)
        return xw.max(-1), jnp.argmax(xw, -1)

    def unpool(v, arg, lout):
        n, c, p = v.shape
        win = jnp.where(arg[..., None] == jnp.arange(2), v[..., None], 0.0)
        out = jnp.zeros((n, c, lout), jnp.float32)
        return out.at[:, :, :2 * p].set(win.reshape(n, c, 2 * p))

    h1 = conv(x, raw["w1"], raw["b1"]); p1, i1 = pool(h1)
    h2 = conv(p1, raw["w2"], raw["b2"]); p2, i2 = pool(h2)
    h3 = conv(p2, raw["w3"], raw["b3"]); p3, i3 = pool(h3)
    u3 = unpool(p3, i3, h3.shape[2])
    q1 = deconv(u3, raw["d1"], raw["db1"])
    u2 = unpool(q1, i2, h2.shape[2])
    q2 = deconv(u2, raw["d2"], raw["db2"])
    u1 = unpool(q2, i1, h1.shape[2])
    return deconv(u1, raw["d3"], raw["db3"])


# ----------------------------------- main -------------------------------------

if __name__ == "__main__":
    key = jax.random.PRNGKey(0)
    k_x, k_p = jax.random.split(key)

    N, L0, B = 16, 64, 8        # (N, 1, L0) NCL input; B samples per grid step
    x = jax.random.normal(k_x, (N, 1, L0), jnp.float32)

    raw = init_raw_params(k_p)
    kparams = kernel_params(raw)
    masks = unpool_lane_masks(B, L0)

    # f32 MXU path: bit-stable pooling decisions -> strict check vs reference.
    out = jax.block_until_ready(
        autoencoder3_forward(x, kparams, masks, block_b=B))
    ref = jax.block_until_ready(reference_forward(x, raw))
    assert out.shape == (N, 1, L0), out.shape
    assert jnp.allclose(out, ref, atol=1e-3, rtol=1e-3), (
        float(jnp.max(jnp.abs(out - ref))))

    # bf16 MXU path (v6e/v7x throughput): values match to bf16 accuracy, but
    # near-tie max-pool winners can legitimately flip vs the f32 reference, so
    # only sanity-check shape / finiteness here.
    out_bf16 = jax.block_until_ready(
        autoencoder3_forward(x, kparams, masks, block_b=B,
                             mxu_dtype=jnp.bfloat16))
    assert out_bf16.shape == (N, 1, L0), out_bf16.shape
    assert bool(jnp.all(jnp.isfinite(out_bf16)))

    print("KERNEL_OK")
</pallas_src>

<mosaic_0001>
module attributes {stable_mosaic.version = 11 : i64} {
  func.func @probe(%arg0: memref<8x128xf32, #tpu.memory_space<vmem>>, %arg1: memref<8x128xf32, #tpu.memory_space<vmem>>) attributes {dimension_semantics = [], scalar_prefetch = 0 : i64, scratch_operands = 0 : i64, tpu.core_type = #tpu.core_type<tc>} {
    %c0 = arith.constant 0 : index
    %c0_0 = arith.constant 0 : index
    %0 = vector.load %arg0[%c0, %c0_0] : memref<8x128xf32, #tpu.memory_space<vmem>>, vector<8x128xf32>
    %c1_i32 = arith.constant 1 : i32
    %1 = tpu.dynamic_rotate %0 by %c1_i32 dim 1 : vector<8x128xf32>, i32 -> vector<8x128xf32>
    %c0_1 = arith.constant 0 : index
    %c0_2 = arith.constant 0 : index
    %2 = vector.load %arg1[%c0_1, %c0_2] : memref<8x128xf32, #tpu.memory_space<vmem>>, vector<8x128xf32>
    tpu.vector_store %arg1[%c0_1, %c0_2], %1 {strides = array<i32>} : memref<8x128xf32, #tpu.memory_space<vmem>>, vector<8x128xf32>,
    return
  }
}

</mosaic_0001>

<bundles_post_ra>
// kernel: tpu_custom_call.1
= control target key start
LH: loop header
LB: loop body
LE: loop exit
PB: predicated region body
PF: predicated region fallthrough
CT: control target
= control target key end

     0   :  { %6 = vsyncpa [#allocation3], 0  ;;  %s106_s0 = inlined_call_operand.hbm [shape: f32[8,128], index: 0, kind: input, shape index: {}]   ;;  %s107_s1 = inlined_call_operand.hbm [shape: f32[8,128], index: 1, kind: output, shape index: {}]  }
   0x1   :  { %7 = vsyncpa [#allocation4], 0  ;;  %s87_s6 = smov [#allocation2]  }
   0x2   :  { %s14_s7 = sshll.u32 %s87_s6, 4  ;;  %s15_s7 = int_to_ptr.vmem [resolvable:$true] %s14_s7 }
   0x3   :  { %s51_s8 = scalar_lea.vmem %s15_s7, 128  ;;  %p56_p1 = scmp.lt.s32.totalorder %s15_s7, %s15_s7 }
   0x4   :  { %p52_p0 = scmp.ne.s32.totalorder %s15_s7, %s51_s8  ;;  %p57_p2 = scmp.lt.s32.totalorder %s51_s8, %s51_s8 }
   0x6   :  { %p58_p3 = por %p57_p2, %p56_p1 }
   0x8   :  { %p59_p4 = pnand %p58_p3, %p52_p0 }
   0xa   :  { %62 = shalt.err (!%p59_p4)
}
   0xb   :  { %17 = dma.hbm_to_vmem [thread:$0]  %s106_s0, 128, %s15_s7, [#allocation3]  }
   0xc   :  { %83 = dma.done.wait [#allocation3], 128  }
   0xd   :  { %84 = vsyncadd [#allocation3], 4294967168  ;;  %v21_v0 = vld [vmem:[#allocation2] sm:$0xff]  ;;  %s88_s11 = smov 1   ;;  %s89_s12 = smov [#allocation5]  }
   0xe   :  { %22 = vrot.lane.b32.xlu0 %v21_v0, %s88_s11  ;;  %s31_s13 = sshll.u32 %s89_s12, 4  ;;  %s32_s13 = int_to_ptr.vmem [resolvable:$true] %s31_s13 }
   0xf   :  { %s63_s14 = scalar_lea.vmem %s32_s13, 128  ;;  %p68_p6 = scmp.lt.s32.totalorder %s32_s13, %s32_s13 }
  0x10   :  { %p64_p5 = scmp.ne.s32.totalorder %s32_s13, %s63_s14  ;;  %p69_p7 = scmp.lt.s32.totalorder %s63_s14, %s63_s14 }
  0x12   :  { %p70_p8 = por %p69_p7, %p68_p6 }
  0x14   :  { %p71_p9 = pnand %p70_p8, %p64_p5 }
  0x80   :  { %v23_v1 = vpop.permute.xlu0 %22 }
  0x81   :  { %24 = vst [vmem:[#allocation5] sm:$0xff] %v23_v1 }
  0x82   :  { %74 = shalt.err (!%p71_p9)
}
  0x83   :  { %34 = dma.vmem_to_hbm [thread:$0]  %s32_s13, 128, %s107_s1, [#allocation4]  }
  0x84   :  { %85 = dma.done.wait [#allocation4], 128  }
  0x85   :  { %86 = vsyncadd [#allocation4], 4294967168 }
  0x86   :  { %38 = vsyncpa [#allocation3], 1 }
  0x87   :  { %39 = vsyncpa [#allocation4], 1 }

</bundles_post_ra>
